<compile_context>
chip_gen: v5e
topology: v5e:2x2
jax: 0.10.0
libtpu: 0.0.40
codegen_flags: <defaults>
</compile_context>

<pallas_src>
import math

import jax
import jax.numpy as jnp
from jax.experimental import pallas as pl
from jax.experimental.pallas import tpu as pltpu

_VMEM_LIMIT_BYTES = 48 * 1024 * 1024   # fits v5e/v6e (128 MiB) and v7x (64 MiB)
_BLOCK_BYTES_TARGET = 4 * 1024 * 1024  # ~4 MiB blocks -> ~16 MiB pipelined footprint


def _copy_kernel(x_ref, o_ref):
    # Lane-dense tile in VMEM -> identical tile out.  The 4D->2D collapse
    # already happened (for free) in the wrapper; no in-kernel reshape.
    o_ref[...] = x_ref[...]


def _row_align(itemsize):
    # Sublane packing: f32 -> 8 rows/vreg, bf16 -> 16, int8/fp8 -> 32.
    return 8 * max(1, 4 // int(itemsize))


def _pick_block(dim, pref, align):
    """Block size: full dim if it fits, else `pref` rounded down to `align`.

    Either choice satisfies the (8, 128) BlockSpec rule: the block is a
    multiple of `align`, or it equals the full array dimension.
    """
    if dim <= pref:
        return dim
    return max(align, (pref // align) * align)


def _choose_slab_cols(total):
    """Largest multiple of 128 that divides `total` (capped), or 0 if none.

    The cap keeps rows >= ~8 for big tensors so sublane tiling stays dense
    and the row grid can shard across v7x's two TensorCores.
    """
    if total % 128 != 0:
        return 0
    cap = 32768
    if total >= 8 * 128:
        cap = min(cap, total // 8)
    cap = max(128, (cap // 128) * 128)
    d = cap
    while d >= 128:
        if total % d == 0:
            return d
        d -= 128
    return 128  # unreachable: 128 divides total


def flatten_axis1(x, *, use_kernel=True, donate=False):
    """Pallas equivalent of Flatten(axis=1).forward(x).

    use_kernel=False is the recommended production path (metadata-only
    reshape, zero HBM traffic).  use_kernel=True routes the data through a
    tiled, pipelined, lane-dense Pallas copy for composition/benchmarking.
    """
    n = x.shape[0]
    chw = math.prod(x.shape[1:]) if x.ndim > 1 else 1

    # Free, zero-traffic reshape (row-major collapse == torch .reshape(N, -1)).
    x2d = jnp.reshape(x, (n, chw))
    if not use_kernel:
        return x2d

    itemsize = jnp.dtype(x.dtype).itemsize
    total = n * chw
    total_bytes = 2 * total * itemsize          # one read + one write of HBM
    align_rows = _row_align(itemsize)
    block_elems = max(1, _BLOCK_BYTES_TARGET // itemsize)
    aliases = {0: 0} if donate else {}
    cost = pl.CostEstimate(flops=0, transcendentals=0, bytes_accessed=total_bytes)

    cols = _choose_slab_cols(total)
    if cols:
        # Flat-slab path: always unmasked lane-dense stores, grid decoupled
        # from the logical (N, CHW) shape.
        rows = total // cols
        slab = jnp.reshape(x2d, (rows, cols))   # free
        tr_pref = max(align_rows,
                      (block_elems // cols) // align_rows * align_rows)
        tr = _pick_block(rows, tr_pref, align_rows)
        out = pl.pallas_call(
            _copy_kernel,
            out_shape=jax.ShapeDtypeStruct((rows, cols), x.dtype),
            grid=(pl.cdiv(rows, tr),),
            in_specs=[pl.BlockSpec((tr, cols), lambda i: (i, 0))],
            out_specs=pl.BlockSpec((tr, cols), lambda i: (i, 0)),
            input_output_aliases=aliases,
            cost_estimate=cost,
            compiler_params=pltpu.CompilerParams(
                dimension_semantics=("parallel",),
                vmem_limit_bytes=_VMEM_LIMIT_BYTES),
        )(slab)
        return jnp.reshape(out, (n, chw))       # free

    # Fallback: CHW*N not a multiple of 128 -> copy on the logical (N, CHW)
    # layout; partial-lane stores are masked (correct, slightly slower).
    tc = _pick_block(chw, 2048, 128)
    tn_pref = max(align_rows,
                  (block_elems // max(tc, 1)) // align_rows * align_rows)
    tn = _pick_block(n, tn_pref, align_rows)
    return pl.pallas_call(
        _copy_kernel,
        out_shape=jax.ShapeDtypeStruct((n, chw), x.dtype),
        grid=(pl.cdiv(n, tn), pl.cdiv(chw, tc)),
        in_specs=[pl.BlockSpec((tn, tc), lambda i, j: (i, j))],
        out_specs=pl.BlockSpec((tn, tc), lambda i, j: (i, j)),
        input_output_aliases=aliases,
        cost_estimate=cost,
        compiler_params=pltpu.CompilerParams(
            dimension_semantics=("parallel", "parallel"),
            vmem_limit_bytes=_VMEM_LIMIT_BYTES),
    )(x2d)


if __name__ == "__main__":
    key = jax.random.PRNGKey(0)
    # Small NCHW input consistent with the module's expected conv-feature input.
    x = jax.random.normal(key, (2, 4, 16, 16), dtype=jnp.float32)

    # Reference (== torch .reshape(N, -1)).
    y_ref = x.reshape(x.shape[0], -1)

    # Recommended zero-cost path (no kernel launch, no HBM traffic).
    y_fast = jax.block_until_ready(flatten_axis1(x, use_kernel=False))

    # Pallas flat-slab tiled-copy path.
    y_kern = jax.block_until_ready(flatten_axis1(x, use_kernel=True))

    assert y_fast.shape == (2, 4 * 16 * 16), y_fast.shape
    assert y_kern.shape == (2, 4 * 16 * 16), y_kern.shape
    assert y_kern.dtype == x.dtype
    assert jnp.array_equal(y_fast, y_ref), "mismatch vs reference flatten (fast path)"
    assert jnp.array_equal(y_kern, y_ref), "mismatch vs reference flatten (kernel path)"

    # Also exercise the non-128-aligned fallback path (CHW = 3*7*7 = 147).
    x2 = jax.random.normal(jax.random.PRNGKey(0), (2, 3, 7, 7), dtype=jnp.float32)
    y2 = jax.block_until_ready(flatten_axis1(x2, use_kernel=True))
    assert jnp.array_equal(y2, x2.reshape(2, -1)), "mismatch on fallback path"

    print("KERNEL_OK")
</pallas_src>

<mosaic_0001>
module attributes {stable_mosaic.version = 11 : i64} {
  func.func @_copy_kernel(%arg0: i32, %arg1: memref<8x256xf32, #tpu.memory_space<vmem>>, %arg2: memref<8x256xf32, #tpu.memory_space<vmem>>) attributes {dimension_semantics = [#tpu.dimension_semantics<parallel>], iteration_bounds = array<i64: 1>, scalar_prefetch = 0 : i64, scratch_operands = 0 : i64, tpu.core_type = #tpu.core_type<tc>, window_params = [{transform_indices = @transform_0, window_bounds = array<i64: 8, 256>}, {transform_indices = @transform_1, window_bounds = array<i64: 8, 256>}]} {
    %c0 = arith.constant 0 : index
    %c0_0 = arith.constant 0 : index
    %0 = vector.load %arg1[%c0, %c0_0] : memref<8x256xf32, #tpu.memory_space<vmem>>, vector<8x256xf32>
    %c0_1 = arith.constant 0 : index
    %c0_2 = arith.constant 0 : index
    %1 = vector.load %arg2[%c0_1, %c0_2] : memref<8x256xf32, #tpu.memory_space<vmem>>, vector<8x256xf32>
    tpu.vector_store %arg2[%c0_1, %c0_2], %0 {strides = array<i32>} : memref<8x256xf32, #tpu.memory_space<vmem>>, vector<8x256xf32>,
    return
  }
  func.func @transform_0(%arg0: i32) -> (i32, i32) {
    %c0_i32 = arith.constant 0 : i32
    %c0_i32_0 = arith.constant 0 : i32
    return %arg0, %c0_i32 : i32, i32
  }
  func.func @transform_1(%arg0: i32) -> (i32, i32) {
    %c0_i32 = arith.constant 0 : i32
    %c0_i32_0 = arith.constant 0 : i32
    return %arg0, %c0_i32 : i32, i32
  }
}

</mosaic_0001>

<bundles_post_ra>
// kernel: tpu_custom_call.1
= control target key start
LH: loop header
LB: loop body
LE: loop exit
PB: predicated region body
PF: predicated region fallthrough
CT: control target
= control target key end

     0   :  { %6 = vsyncpa [#allocation3], 0  ;;  %s116_s0 = inlined_call_operand.hbm [shape: f32[8,256], index: 0, kind: input, shape index: {}]   ;;  %s117_s1 = inlined_call_operand.hbm [shape: f32[8,256], index: 1, kind: output, shape index: {}]  }
   0x1   :  { %7 = vsyncpa [#allocation4], 0  ;;  %s13_s8 = sshll.u32 %s116_s0, 4  ;;  %s98_s9 = smov [#allocation2]   ;;  %s14_s8 = int_to_ptr.hbm [resolvable:$true] %s13_s8 }
   0x2   :  { %s15_s10 = sshll.u32 %s98_s9, 4  ;;  %s16_s10 = int_to_ptr.vmem [resolvable:$true] %s15_s10 }
   0x3   :  { %18 = dma.hbm_to_vmem [thread:$0]  %s14_s8, 256, %s16_s10, [#allocation3]  }
   0x4   :  { %94 = dma.done.wait [#allocation3], 256  }
   0x5   :  { %95 = vsyncadd [#allocation3], 4294967040  ;;  %s99_s11 = smov [#allocation5]   ;;  %s34_s15 = sshll.u32 %s117_s1, 4  ;;  %v23_v0 = vld [vmem:[#allocation2] sm:$0xff]  ;;  %v24_v1 = vld [vmem:[#allocation2 + $0x8] sm:$0xff]  ;;  %s35_s15 = int_to_ptr.hbm [resolvable:$true] %s34_s15 }
   0x6   :  { %s32_s12 = sshll.u32 %s99_s11, 4  ;;  %25 = vst [vmem:[#allocation5] sm:$0xff] %v23_v0  ;;  %s33_s12 = int_to_ptr.vmem [resolvable:$true] %s32_s12 }
   0x7   :  { %26 = vst [vmem:[#allocation5 + $0x8] sm:$0xff] %v24_v1 }
   0x8   :  { %37 = dma.vmem_to_hbm [thread:$0]  %s33_s12, 256, %s35_s15, [#allocation4]  }
   0x9   :  { %96 = dma.done.wait [#allocation4], 256  }
   0xa   :  { %97 = vsyncadd [#allocation4], 4294967040 }
   0xb   :  { %42 = vsyncpa [#allocation3], 1 }
   0xc   :  { %43 = vsyncpa [#allocation4], 1 }

</bundles_post_ra>
